<compile_context>
chip_gen: v7x
topology: tpu7x:2x2x1
jax: 0.10.0
libtpu: 0.0.40
codegen_flags: <defaults>
</compile_context>

<pallas_src>
import functools
import math

import jax
import jax.numpy as jnp
from jax.experimental import pallas as pl
from jax.experimental.pallas import tpu as pltpu


# ---------------------------------------------------------------------------
# helpers
# ---------------------------------------------------------------------------
def _swish(x, alpha, beta):
    # SpookyNet trainable Swish: alpha * x * sigmoid(beta * x)
    return alpha * x * jax.nn.sigmoid(beta * x)


def _round_up(n, m):
    return ((n + m - 1) // m) * m


def _branch_mlp(params, e, br):
    """featurize_{k,v}(e) + ResidualMLP on the [B, 1] molecule energies.

    Plain XLA on purpose: B is tiny, so these [B,F]@[F,F] matmuls would waste
    the MXU and serialize the Pallas kernels' critical path.
    """
    num_residual = params["w1"].shape[1]
    h = e * params["wf"][br] + params["bf"][br]
    for r in range(num_residual):
        y = _swish(h, params["a1"][br, r], params["be1"][br, r])
        y = y @ params["w1"][br, r] + params["c1"][br, r]
        y = _swish(y, params["a2"][br, r], params["be2"][br, r])
        y = y @ params["w2"][br, r] + params["c2"][br, r]
        h = h + y
    h = _swish(h, params["ao"][br, 0], params["bo"][br, 0])
    return h @ params["wo"][br] + params["co"][br, 0]          # [B, F]


# ---------------------------------------------------------------------------
# Kernel 1: dot[i] = x_i . W'[:, batch_seg[i]]   with   W' = Wq @ kb.T
#   grid = (row tiles,), "parallel".  bf16 operands, f32 accumulation.
# ---------------------------------------------------------------------------
def _dot_kernel(seg_ref, x_ref, wp_ref, dot_ref):
    tn = x_ref.shape[0]
    B = wp_ref.shape[1]
    qk = jnp.dot(x_ref[...], wp_ref[...],
                 preferred_element_type=jnp.float32)                         # [tn, B]
    onehot = seg_ref[...] == jax.lax.broadcasted_iota(jnp.int32, (tn, B), 1)
    dot_ref[...] = jnp.sum(jnp.where(onehot, qk, 0.0), axis=-1, keepdims=True)  # [tn, 1]


# ---------------------------------------------------------------------------
# Kernel 2: out[i] = w_i * vb[batch_seg[i]]
#   The gather of vb rows and the per-row scaling are fused into one
#   (onehot-masked w) @ vb matmul.  Single phase, "parallel" grid.
# ---------------------------------------------------------------------------
def _attend_kernel(seg_ref, w_ref, vb_ref, out_ref):
    tn = w_ref.shape[0]
    B = vb_ref.shape[0]
    onehot = seg_ref[...] == jax.lax.broadcasted_iota(jnp.int32, (tn, B), 1)
    wmat = jnp.where(onehot, w_ref[...], 0.0)                                # [tn, B]
    out_ref[...] = jnp.dot(wmat, vb_ref[...],
                           preferred_element_type=jnp.float32).astype(out_ref.dtype)


# ---------------------------------------------------------------------------
# wrapper
# ---------------------------------------------------------------------------
def nonlinear_electronic_embedding(params, x, E, num_batch, batch_seg,
                                   eps=1e-8, row_tile=512):
    N, F = x.shape
    B = int(num_batch)
    out_dtype = x.dtype
    x_f32 = x.astype(jnp.float32)

    # hoisted per-molecule branches (tiny, plain XLA)
    e = E.astype(jnp.float32)[:, None]                       # [B, 1]
    kb = _branch_mlp(params, e, 0)                           # [B, F]
    vb = _branch_mlp(params, e, 1)                           # [B, F]  (stays f32, resident)

    # fold Wq into kb.T:  (x @ Wq) @ kb.T == x @ (Wq @ kb.T)
    wprime = (params["wq"] @ kb.T).astype(jnp.bfloat16)      # [F, B]
    x_bf = x_f32.astype(jnp.bfloat16)                        # heavy stream -> bf16

    # row tiling / padding (multiples of 16 sublanes for bf16 packing)
    tn = max(16, min(_round_up(row_tile, 16), _round_up(N, 16)))
    n_pad = _round_up(N, tn)
    seg = batch_seg.astype(jnp.int32)
    if n_pad != N:
        x_bf = jnp.pad(x_bf, ((0, n_pad - N), (0, 0)))
        seg_p = jnp.pad(seg, (0, n_pad - N), constant_values=B)   # OOR id => masked out
    else:
        seg_p = seg
    seg2d = seg_p[:, None]                                   # [n_pad, 1]
    nt = n_pad // tn

    cparams = pltpu.CompilerParams(
        dimension_semantics=("parallel",), vmem_limit_bytes=32 * 1024 * 1024)

    # ---- Kernel 1: per-atom dot products ---------------------------------
    dot = pl.pallas_call(
        _dot_kernel,
        out_shape=jax.ShapeDtypeStruct((n_pad, 1), jnp.float32),
        grid=(nt,),
        in_specs=[
            pl.BlockSpec((tn, 1), lambda i: (i, 0)),         # batch_seg
            pl.BlockSpec((tn, F), lambda i: (i, 0)),         # x (bf16)
            pl.BlockSpec((F, B), lambda i: (0, 0)),          # W' = Wq @ kb.T (resident)
        ],
        out_specs=pl.BlockSpec((tn, 1), lambda i: (i, 0)),
        compiler_params=cparams,
    )(seg2d, x_bf, wprime)

    # ---- XLA: per-molecule softmax stats on the tiny [N] dot vector ------
    dot_n = dot[:N, 0]                                       # [N] f32
    inv_sqrt_d = 1.0 / math.sqrt(F)
    if B > 1:
        # torch num_batch > 1 path: maximum = max(mask * dot) -> clamped at 0
        segmax = jax.ops.segment_max(dot_n, seg, num_segments=B)
        maximum = jnp.maximum(segmax, 0.0)                   # [B]
    else:
        maximum = jnp.max(dot_n)[None]                       # torch num_batch == 1 path
    a = jnp.exp((dot_n - maximum[seg]) * inv_sqrt_d)         # [N]
    anorm = jax.ops.segment_sum(a, seg, num_segments=B)      # [B]
    w = a / (anorm[seg] + eps)                               # [N] per-atom softmax weight
    w_pad = jnp.pad(w, (0, n_pad - N))[:, None]              # [n_pad, 1]

    # ---- Kernel 2: fused v[batch_seg] gather + scaling --------------------
    out = pl.pallas_call(
        _attend_kernel,
        out_shape=jax.ShapeDtypeStruct((n_pad, F), out_dtype),
        grid=(nt,),
        in_specs=[
            pl.BlockSpec((tn, 1), lambda i: (i, 0)),         # batch_seg
            pl.BlockSpec((tn, 1), lambda i: (i, 0)),         # w
            pl.BlockSpec((B, F), lambda i: (0, 0)),          # vb (resident, f32)
        ],
        out_specs=pl.BlockSpec((tn, F), lambda i: (i, 0)),
        compiler_params=cparams,
    )(seg2d, w_pad, vb)

    return out[:N]


# ---------------------------------------------------------------------------
# deterministic synthetic parameters (shapes match the torch module; random
# instead of zero_init so the numerical test is non-trivial)
# ---------------------------------------------------------------------------
def init_params(key, F, R):
    ks = jax.random.split(key, 9)

    def w(k, shape, scale=0.1):
        return scale * jax.random.normal(k, shape, jnp.float32)

    def with_zero_v(arr_k):  # k-branch biases stacked with zero v-branch biases
        return jnp.concatenate([arr_k, jnp.zeros_like(arr_k)], axis=0)

    return dict(
        wq=w(ks[0], (F, F)),                      # linear_q.weight.T
        wf=w(ks[1], (2, 1, F)),                   # featurize_{k,v}.weight.T
        bf=with_zero_v(w(ks[2], (1, 1, F))),      # featurize_k.bias, v has none
        a1=jnp.ones((2, R, F)), be1=1.702 * jnp.ones((2, R, F)),
        w1=w(ks[3], (2, R, F, F)),
        c1=with_zero_v(w(ks[4], (1, R, F))),
        a2=jnp.ones((2, R, F)), be2=1.702 * jnp.ones((2, R, F)),
        w2=w(ks[5], (2, R, F, F)),
        c2=with_zero_v(w(ks[6], (1, R, F))),
        ao=jnp.ones((2, 1, F)), bo=1.702 * jnp.ones((2, 1, F)),
        wo=w(ks[7], (2, F, F)),
        co=with_zero_v(w(ks[8], (1, 1, F))),
    )


def ref_forward(params, x, E, num_batch, batch_seg, eps=1e-8):
    """Pure-JAX f32 reference mirroring the PyTorch forward (num_batch > 1 path)."""
    F = x.shape[-1]
    e = E.astype(jnp.float32)[:, None]
    q = x @ params["wq"]
    k = _branch_mlp(params, e, 0)[batch_seg]
    v = _branch_mlp(params, e, 1)[batch_seg]
    dot = jnp.sum(k * q, axis=-1)
    mask = jax.nn.one_hot(batch_seg, num_batch, dtype=x.dtype).T
    maximum = jnp.max(mask * dot[None, :], axis=-1)[batch_seg]
    a = jnp.exp((dot - maximum) / F ** 0.5)
    anorm = jax.ops.segment_sum(a, batch_seg, num_segments=num_batch)[batch_seg]
    return (a / (anorm + eps))[:, None] * v


if __name__ == "__main__":
    key = jax.random.PRNGKey(0)
    N, F, B, R = 512, 128, 4, 2        # atoms, features (lane-dense), molecules, residuals
    kx, ke, ks, kp = jax.random.split(key, 4)

    x = jax.random.normal(kx, (N, F), jnp.float32)
    E = jax.random.normal(ke, (B,), jnp.float32)
    batch_seg = jnp.sort(jax.random.randint(ks, (N,), 0, B)).astype(jnp.int32)
    params = init_params(kp, F, R)

    out = nonlinear_electronic_embedding(params, x, E, B, batch_seg)
    out = jax.block_until_ready(out)

    ref = ref_forward(params, x, E, B, batch_seg)
    assert out.shape == (N, F) and out.dtype == jnp.float32
    # tolerance allows for bf16 heavy streams (x, Wq@kb.T) vs the f32 reference
    assert jnp.allclose(out, ref, atol=1e-2, rtol=1e-2), float(jnp.max(jnp.abs(out - ref)))
    print("KERNEL_OK")
</pallas_src>

<mosaic_0001>
module attributes {stable_mosaic.version = 11 : i64} {
  func.func @_dot_kernel(%arg0: i32, %arg1: memref<512x1xi32, #tpu.memory_space<vmem>>, %arg2: memref<512x128xbf16, #tpu.memory_space<vmem>>, %arg3: memref<128x4xbf16, #tpu.memory_space<vmem>>, %arg4: memref<512x1xf32, #tpu.memory_space<vmem>>) attributes {dimension_semantics = [#tpu.dimension_semantics<parallel>], iteration_bounds = array<i64: 1>, scalar_prefetch = 0 : i64, scratch_operands = 0 : i64, tpu.core_type = #tpu.core_type<tc>, window_params = [{transform_indices = @transform_0, window_bounds = array<i64: 512, 1>}, {transform_indices = @transform_1, window_bounds = array<i64: 512, 128>}, {pipeline_mode = #tpu.pipeline_mode<synchronous>, transform_indices = @transform_2, window_bounds = array<i64: 128, 4>}, {transform_indices = @transform_3, window_bounds = array<i64: 512, 1>}]} {
    %c0 = arith.constant 0 : index
    %c0_0 = arith.constant 0 : index
    %0 = vector.load %arg2[%c0, %c0_0] : memref<512x128xbf16, #tpu.memory_space<vmem>>, vector<512x128xbf16>
    %c0_1 = arith.constant 0 : index
    %c0_2 = arith.constant 0 : index
    %1 = vector.load %arg3[%c0_1, %c0_2] : memref<128x4xbf16, #tpu.memory_space<vmem>>, vector<128x4xbf16>
    %cst = arith.constant dense<0.000000e+00> : vector<512x4xf32>
    %2 = tpu.matmul %0, %1, %cst {dimension_numbers = #tpu.dot_dimension_numbers<[1], [0], [0], [1], [0, 0, 1, 1], [], []>} : vector<512x128xbf16>, vector<128x4xbf16>, vector<512x4xf32> -> vector<512x4xf32>
    %c0_3 = arith.constant 0 : index
    %c0_4 = arith.constant 0 : index
    %3 = vector.load %arg1[%c0_3, %c0_4] : memref<512x1xi32, #tpu.memory_space<vmem>>, vector<512x1xi32>
    %4 = tpu.iota {dimensions = array<i32: 1>} : vector<512x4xi32>
    %5 = vector.broadcast %3 : vector<512x1xi32> to vector<512x4xi32>
    %6 = arith.cmpi eq, %5, %4 : vector<512x4xi32>
    %cst_5 = arith.constant 0.000000e+00 : f32
    %7 = vector.broadcast %cst_5 : f32 to vector<512x4xf32>
    %8 = arith.select %6, %2, %7 : vector<512x4xi1>, vector<512x4xf32>
    %cst_6 = arith.constant dense<0.000000e+00> : vector<512xf32>
    %9 = vector.multi_reduction <add>, %8, %cst_6 [1] : vector<512x4xf32> to vector<512xf32>
    %10 = vector.shape_cast %9 : vector<512xf32> to vector<512x1xf32>
    %c0_7 = arith.constant 0 : index
    %c0_8 = arith.constant 0 : index
    %11 = vector.load %arg4[%c0_7, %c0_8] : memref<512x1xf32, #tpu.memory_space<vmem>>, vector<512x1xf32>
    tpu.vector_store %arg4[%c0_7, %c0_8], %10 {strides = array<i32>} : memref<512x1xf32, #tpu.memory_space<vmem>>, vector<512x1xf32>,
    return
  }
  func.func @transform_0(%arg0: i32) -> (i32, i32) {
    %c0_i32 = arith.constant 0 : i32
    %c0_i32_0 = arith.constant 0 : i32
    return %arg0, %c0_i32 : i32, i32
  }
  func.func @transform_1(%arg0: i32) -> (i32, i32) {
    %c0_i32 = arith.constant 0 : i32
    %c0_i32_0 = arith.constant 0 : i32
    return %arg0, %c0_i32 : i32, i32
  }
  func.func @transform_2(%arg0: i32) -> (i32, i32) {
    %c0_i32 = arith.constant 0 : i32
    %c0_i32_0 = arith.constant 0 : i32
    %c0_i32_1 = arith.constant 0 : i32
    return %c0_i32, %c0_i32_0 : i32, i32
  }
  func.func @transform_3(%arg0: i32) -> (i32, i32) {
    %c0_i32 = arith.constant 0 : i32
    %c0_i32_0 = arith.constant 0 : i32
    return %arg0, %c0_i32 : i32, i32
  }
}

</mosaic_0001>

<bundles_post_ra>
// kernel: tpu_custom_call.1
= control target key start
LH: loop header
LB: loop body
LE: loop exit
PB: predicated region body
PF: predicated region fallthrough
CT: control target
= control target key end

     0   :  { %v1491_v0 = vmov 0   ;;  %vm1010_vm0 = vcmask 31744   ;;  %s2611_s0 = inlined_call_operand.vmem [shape: s32[512,1], index: 0, kind: input, shape index: {}]   ;;  %s2612_s2 = inlined_call_operand.vmem [shape: bf16[128,4], index: 2, kind: input, shape index: {}]   ;;  %s2613_s1 = inlined_call_operand.vmem [shape: bf16[512,128], index: 1, kind: input, shape index: {}]   ;;  %s2614_s3 = inlined_call_operand.vmem [shape: f32[512,1], index: 3, kind: output, shape index: {}]  }
   0x1   :  { %1450 = vset.pattern.permute.xlu1 %v1491_v0  ;;  %1449 = vset.pattern.permute.xlu0 %v1491_v0  ;;  %v626_v1 = vld [vmem:[%s2611_s0 + $0x10] sm:$0xff]  ;;  %v624_v2 = vld [vmem:[%s2611_s0] sm:$0xff]  ;;  %v627_v4 = vld [vmem:[%s2611_s0 + $0x18] sm:$0xff] }
   0x2   :  { %697 = vperm.xlu1 %1450, %v626_v1   ;;  %691 = vperm.xlu0 %1449, %v624_v2   ;;  %v1451_v3 = vld [vmem:[%s2612_s2] sm:$0xff]   ;;  %v625_v5 = vld [vmem:[%s2611_s0 + $0x8] sm:$0xff]  ;;  %v1453_v9 = vld [vmem:[%s2612_s2 + $0x10] sm:$0xff]  }
   0x3   :  { %1352 = vmatprep.subr.bf16.mxu0 %v1451_v3  ;;  %1432 = vmatprep.subr.bf16.mxu1 %v1451_v3  ;;  %v1452_v6 = vld [vmem:[%s2612_s2 + $0x8] sm:$0xff]   ;;  %v628_v8 = vld [vmem:[%s2611_s0 + $0x20] sm:$0xff]  ;;  %v631_v10 = vld [vmem:[%s2611_s0 + $0x38] sm:$0xff] }
   0x4   :  { %1353 = vmatpush3.bf16.msra.mxu0 %v1451_v3  ;;  %1440 = vmatpush3.bf16.msra.mxu1 %v1451_v3  ;;  %v629_v7 = vld [vmem:[%s2611_s0 + $0x28] sm:$0xff]  ;;  %v630_v11 = vld [vmem:[%s2611_s0 + $0x30] sm:$0xff]  ;;  %v1454_v12 = vld [vmem:[%s2612_s2 + $0x18] sm:$0xff]  }
   0x5   :  { %1354 = vmatprep.subr.bf16.mxu0 %v1452_v6  ;;  %1433 = vmatprep.subr.bf16.mxu1 %v1452_v6  ;;  %v633_v13 = vld [vmem:[%s2611_s0 + $0x48] sm:$0xff]  ;;  %v632_v14 = vld [vmem:[%s2611_s0 + $0x40] sm:$0xff]  ;;  %v635_v18 = vld [vmem:[%s2611_s0 + $0x58] sm:$0xff] }
   0x6   :  { %700 = vperm.xlu1 %1450, %v627_v4   ;;  %694 = vperm.xlu0 %1449, %v625_v5   ;;  %v1455_v15 = vld [vmem:[%s2612_s2 + $0x20] sm:$0xff]   ;;  %v634_v19 = vld [vmem:[%s2611_s0 + $0x50] sm:$0xff]  ;;  %v1456_v20 = vld [vmem:[%s2612_s2 + $0x28] sm:$0xff]  }
   0x7   :  { %v1459_v16 = vld [vmem:[%s2613_s1] sm:$0xff]   ;;  %v637_v21 = vld [vmem:[%s2611_s0 + $0x68] sm:$0xff]  ;;  %v1457_v23 = vld [vmem:[%s2612_s2 + $0x30] sm:$0xff]  }
   0x8   :  { %1355 = vmatpush3.bf16.msra.mxu0 %v1452_v6  ;;  %1441 = vmatpush3.bf16.msra.mxu1 %v1452_v6  ;;  %v1460_v17 = vld [vmem:[%s2613_s1 + $0x80] sm:$0xff]   ;;  %v639_v24 = vld [vmem:[%s2611_s0 + $0x78] sm:$0xff]  ;;  %v638_v25 = vld [vmem:[%s2611_s0 + $0x70] sm:$0xff] }
   0x9   :  { %1356 = vmatprep.subr.bf16.mxu0 %v1453_v9  ;;  %1434 = vmatprep.subr.bf16.mxu1 %v1453_v9  ;;  %v636_v22 = vld [vmem:[%s2611_s0 + $0x60] sm:$0xff]  ;;  %v1458_v26 = vld [vmem:[%s2612_s2 + $0x38] sm:$0xff]   ;;  %v641_v27 = vld [vmem:[%s2611_s0 + $0x88] sm:$0xff] }
   0xa   :  { %706 = vperm.xlu1 %1450, %v629_v7   ;;  %703 = vperm.xlu0 %1449, %v628_v8   ;;  %v640_v28 = vld [vmem:[%s2611_s0 + $0x80] sm:$0xff]  ;;  %v1461_v29 = vld [vmem:[%s2613_s1 + $0x8] sm:$0xff]   ;;  %v1463_v31 = vld [vmem:[%s2613_s1 + $0x10] sm:$0xff]  }
   0xb   :  { %1368 = vmatprep.mubr.bf16.mxu0 %v1459_v16  ;;  %1400 = vmatprep.mubr.bf16.mxu1 %v1460_v17  ;;  %v1462_v30 = vld [vmem:[%s2613_s1 + $0x88] sm:$0xff]   ;;  %v1464_v32 = vld [vmem:[%s2613_s1 + $0x90] sm:$0xff]   ;;  %v643_v33 = vld [vmem:[%s2611_s0 + $0x98] sm:$0xff] }
   0xc   :  { %1357 = vmatpush3.bf16.msra.mxu0 %v1453_v9  ;;  %1442 = vmatpush3.bf16.msra.mxu1 %v1453_v9  ;;  %v642_v34 = vld [vmem:[%s2611_s0 + $0x90] sm:$0xff]  ;;  %v645_v35 = vld [vmem:[%s2611_s0 + $0xa8] sm:$0xff]  ;;  %v644_v36 = vld [vmem:[%s2611_s0 + $0xa0] sm:$0xff] }
   0xd   :  { %1358 = vmatprep.subr.bf16.mxu0 %v1454_v12  ;;  %1435 = vmatprep.subr.bf16.mxu1 %v1454_v12  ;;  %v1465_v37 = vld [vmem:[%s2613_s1 + $0x18] sm:$0xff]   ;;  %v1467_v39 = vld [vmem:[%s2613_s1 + $0x20] sm:$0xff]   ;;  %v646_v42 = vld [vmem:[%s2611_s0 + $0xb0] sm:$0xff] }
   0xe   :  { %712 = vperm.xlu1 %1450, %v631_v10   ;;  %709 = vperm.xlu0 %1449, %v630_v11   ;;  %v1466_v38 = vld [vmem:[%s2613_s1 + $0x98] sm:$0xff]   ;;  %v1468_v40 = vld [vmem:[%s2613_s1 + $0xa0] sm:$0xff]   ;;  %v649_v43 = vld [vmem:[%s2611_s0 + $0xc8] sm:$0xff] }
   0xf   :  { %v647_v41 = vld [vmem:[%s2611_s0 + $0xb8] sm:$0xff]  ;;  %v648_v44 = vld [vmem:[%s2611_s0 + $0xc0] sm:$0xff]  ;;  %v1469_v45 = vld [vmem:[%s2613_s1 + $0x28] sm:$0xff]  }
  0x10   :  { %1359 = vmatpush3.bf16.msra.mxu0 %v1454_v12  ;;  %1443 = vmatpush3.bf16.msra.mxu1 %v1454_v12  ;;  %v1470_v46 = vld [vmem:[%s2613_s1 + $0xa8] sm:$0xff]   ;;  %v1471_v47 = vld [vmem:[%s2613_s1 + $0x30] sm:$0xff]   ;;  %v651_v49 = vld [vmem:[%s2611_s0 + $0xd8] sm:$0xff] }
  0x11   :  { %1360 = vmatprep.subr.bf16.mxu0 %v1455_v15  ;;  %1436 = vmatprep.subr.bf16.mxu1 %v1455_v15  ;;  %v1472_v48 = vld [vmem:[%s2613_s1 + $0xb0] sm:$0xff]   ;;  %v653_v51 = vld [vmem:[%s2611_s0 + $0xe8] sm:$0xff]  ;;  %v652_v52 = vld [vmem:[%s2611_s0 + $0xe0] sm:$0xff] }
  0x12   :  { %718 = vperm.xlu1 %1450, %v633_v13   ;;  %715 = vperm.xlu0 %1449, %v632_v14   ;;  %v650_v50 = vld [vmem:[%s2611_s0 + $0xd0] sm:$0xff]  ;;  %v1473_v53 = vld [vmem:[%s2613_s1 + $0x38] sm:$0xff]   ;;  %v1475_v55 = vld [vmem:[%s2613_s1 + $0x40] sm:$0xff]  }
  0x13   :  { %v1474_v54 = vld [vmem:[%s2613_s1 + $0xb8] sm:$0xff]   ;;  %v1476_v56 = vld [vmem:[%s2613_s1 + $0xc0] sm:$0xff]   ;;  %v654_v58 = vld [vmem:[%s2611_s0 + $0xf0] sm:$0xff] }
  0x14   :  { %1361 = vmatpush3.bf16.msra.mxu0 %v1455_v15  ;;  %1444 = vmatpush3.bf16.msra.mxu1 %v1455_v15  ;;  %v655_v57 = vld [vmem:[%s2611_s0 + $0xf8] sm:$0xff]  ;;  %v657_v59 = vld [vmem:[%s2611_s0 + $0x108] sm:$0xff]  ;;  %v656_v60 = vld [vmem:[%s2611_s0 + $0x100] sm:$0xff] }
  0x15   :  { %1362 = vmatprep.subr.bf16.mxu0 %v1456_v20  ;;  %1437 = vmatprep.subr.bf16.mxu1 %v1456_v20  ;;  %v1477_v61 = vld [vmem:[%s2613_s1 + $0x48] sm:$0xff]   ;;  %v1479_v63 = vld [vmem:[%s2613_s1 + $0x50] sm:$0xff]   ;;  %v659_v1 = vld [vmem:[%s2611_s0 + $0x118] sm:$0xff] }
  0x16   :  { %724 = vperm.xlu1 %1450, %v635_v18   ;;  %721 = vperm.xlu0 %1449, %v634_v19   ;;  %v1478_v62 = vld [vmem:[%s2613_s1 + $0xc8] sm:$0xff]   ;;  %v1480_v0 = vld [vmem:[%s2613_s1 + $0xd0] sm:$0xff]   ;;  %v660_v4 = vld [vmem:[%s2611_s0 + $0x120] sm:$0xff] }
  0x17   :  { %v658_v2 = vld [vmem:[%s2611_s0 + $0x110] sm:$0xff]  ;;  %v661_v3 = vld [vmem:[%s2611_s0 + $0x128] sm:$0xff]  ;;  %v1481_v5 = vld [vmem:[%s2613_s1 + $0x58] sm:$0xff]  }
  0x18   :  { %1363 = vmatpush3.bf16.msra.mxu0 %v1456_v20  ;;  %1445 = vmatpush3.bf16.msra.mxu1 %v1456_v20  ;;  %v1482_v6 = vld [vmem:[%s2613_s1 + $0xd8] sm:$0xff]   ;;  %v1483_v7 = vld [vmem:[%s2613_s1 + $0x60] sm:$0xff]   ;;  %v662_v10 = vld [vmem:[%s2611_s0 + $0x130] sm:$0xff] }
  0x19   :  { %1364 = vmatprep.subr.bf16.mxu0 %v1457_v23  ;;  %1438 = vmatprep.subr.bf16.mxu1 %v1457_v23  ;;  %v1484_v8 = vld [vmem:[%s2613_s1 + $0xe0] sm:$0xff]   ;;  %v663_v9 = vld [vmem:[%s2611_s0 + $0x138] sm:$0xff]  ;;  %v665_v11 = vld [vmem:[%s2611_s0 + $0x148] sm:$0xff] }
  0x1a   :  { %730 = vperm.xlu1 %1450, %v637_v21   ;;  %727 = vperm.xlu0 %1449, %v636_v22   ;;  %v664_v12 = vld [vmem:[%s2611_s0 + $0x140] sm:$0xff]  ;;  %v1485_v13 = vld [vmem:[%s2613_s1 + $0x68] sm:$0xff]   ;;  %v1487_v15 = vld [vmem:[%s2613_s1 + $0x70] sm:$0xff]  }
  0x1b   :  { %v1486_v14 = vld [vmem:[%s2613_s1 + $0xe8] sm:$0xff]   ;;  %v1488_v16 = vld [vmem:[%s2613_s1 + $0xf0] sm:$0xff]   ;;  %v667_v17 = vld [vmem:[%s2611_s0 + $0x158] sm:$0xff] }
  0x1c   :  { %1365 = vmatpush3.bf16.msra.mxu0 %v1457_v23  ;;  %1446 = vmatpush3.bf16.msra.mxu1 %v1457_v23  ;;  %v666_v18 = vld [vmem:[%s2611_s0 + $0x150] sm:$0xff]  ;;  %v669_v19 = vld [vmem:[%s2611_s0 + $0x168] sm:$0xff]  ;;  %v668_v20 = vld [vmem:[%s2611_s0 + $0x160] sm:$0xff] }
  0x1d   :  { %1366 = vmatprep.subr.bf16.mxu0 %v1458_v26  ;;  %1439 = vmatprep.subr.bf16.mxu1 %v1458_v26  ;;  %v1489_v21 = vld [vmem:[%s2613_s1 + $0x78] sm:$0xff]  }
  0x1e   :  { %736 = vperm.xlu1 %1450, %v639_v24   ;;  %733 = vperm.xlu0 %1449, %v638_v25   ;;  %v1490_v22 = vld [vmem:[%s2613_s1 + $0xf8] sm:$0xff]   ;;  %v670_v24 = vld [vmem:[%s2611_s0 + $0x170] sm:$0xff]  ;;  %v673_v25 = vld [vmem:[%s2611_s0 + $0x188] sm:$0xff] }
  0x1f   :  { %v671_v23 = vld [vmem:[%s2611_s0 + $0x178] sm:$0xff] }
  0x20   :  { %1367 = vmatpush3.bf16.msra.mxu0 %v1458_v26  ;;  %1447 = vmatpush3.bf16.msra.mxu1 %v1458_v26  ;;  %v672_v26 = vld [vmem:[%s2611_s0 + $0x180] sm:$0xff] }
  0x22   :  { %742 = vperm.xlu1 %1450, %v641_v27   ;;  %739 = vperm.xlu0 %1449, %v640_v28   ;;  %v675_v27 = vld [vmem:[%s2611_s0 + $0x198] sm:$0xff]  ;;  %v674_v28 = vld [vmem:[%s2611_s0 + $0x190] sm:$0xff] }
  0x23   :  { %1369 = vmatmul.mubr.bf16.vlgmr.msra.gmra.mrb[0].mxu0 %v1461_v29  ;;  %1401 = vmatmul.mubr.bf16.vlgmr.msra.gmra.mrb[0].mxu1 %v1462_v30  ;;  %v677_v29 = vld [vmem:[%s2611_s0 + $0x1a8] sm:$0xff]  ;;  %v676_v30 = vld [vmem:[%s2611_s0 + $0x1a0] sm:$0xff] }
  0x24   :  { %1372 = vmatprep.mubr.bf16.mxu0 %v1463_v31  ;;  %1404 = vmatprep.mubr.bf16.mxu1 %v1464_v32  ;;  %v679_v31 = vld [vmem:[%s2611_s0 + $0x1b8] sm:$0xff]  ;;  %v678_v32 = vld [vmem:[%s2611_s0 + $0x1b0] sm:$0xff] }
  0x26   :  { %748 = vperm.xlu1 %1450, %v643_v33   ;;  %745 = vperm.xlu0 %1449, %v642_v34   ;;  %v681_v33 = vld [vmem:[%s2611_s0 + $0x1c8] sm:$0xff]  ;;  %v680_v34 = vld [vmem:[%s2611_s0 + $0x1c0] sm:$0xff] }
  0x2a   :  { %754 = vperm.xlu1 %1450, %v645_v35   ;;  %751 = vperm.xlu0 %1449, %v644_v36   ;;  %v683_v35 = vld [vmem:[%s2611_s0 + $0x1d8] sm:$0xff]  ;;  %v682_v36 = vld [vmem:[%s2611_s0 + $0x1d0] sm:$0xff] }
  0x2b   :  { %1373 = vmatmul.mubr.bf16.gmra.mrb[4].mxu0 %v1465_v37  ;;  %1405 = vmatmul.mubr.bf16.gmra.mrb[4].mxu1 %v1466_v38  ;;  %v685_v37 = vld [vmem:[%s2611_s0 + $0x1e8] sm:$0xff]  ;;  %v684_v38 = vld [vmem:[%s2611_s0 + $0x1e0] sm:$0xff] }
  0x2c   :  { %1376 = vmatprep.mubr.bf16.mxu0 %v1467_v39  ;;  %1408 = vmatprep.mubr.bf16.mxu1 %v1468_v40  ;;  %v687_v39 = vld [vmem:[%s2611_s0 + $0x1f8] sm:$0xff]  ;;  %v686_v40 = vld [vmem:[%s2611_s0 + $0x1f0] sm:$0xff] }
  0x2e   :  { %760 = vperm.xlu1 %1450, %v647_v41   ;;  %757 = vperm.xlu0 %1449, %v646_v42  }
  0x32   :  { %766 = vperm.xlu1 %1450, %v649_v43   ;;  %763 = vperm.xlu0 %1449, %v648_v44  }
  0x33   :  { %1377 = vmatmul.mubr.bf16.gmra.mrb[8].mxu0 %v1469_v45  ;;  %1409 = vmatmul.mubr.bf16.gmra.mrb[8].mxu1 %v1470_v46 }
  0x34   :  { %1380 = vmatprep.mubr.bf16.mxu0 %v1471_v47  ;;  %1412 = vmatprep.mubr.bf16.mxu1 %v1472_v48 }
  0x36   :  { %772 = vperm.xlu1 %1450, %v651_v49   ;;  %769 = vperm.xlu0 %1449, %v650_v50  }
  0x3a   :  { %778 = vperm.xlu1 %1450, %v653_v51   ;;  %775 = vperm.xlu0 %1449, %v652_v52  }
  0x3b   :  { %1381 = vmatmul.mubr.bf16.gmra.mrb[12].mxu0 %v1473_v53  ;;  %1413 = vmatmul.mubr.bf16.gmra.mrb[12].mxu1 %v1474_v54 }
  0x3c   :  { %1384 = vmatprep.mubr.bf16.mxu0 %v1475_v55  ;;  %1416 = vmatprep.mubr.bf16.mxu1 %v1476_v56 }
  0x3e   :  { %784 = vperm.xlu1 %1450, %v655_v57   ;;  %781 = vperm.xlu0 %1449, %v654_v58  }
  0x42   :  { %790 = vperm.xlu1 %1450, %v657_v59   ;;  %787 = vperm.xlu0 %1449, %v656_v60  }
  0x43   :  { %1385 = vmatmul.mubr.bf16.gmra.mrb[16].mxu0 %v1477_v61  ;;  %1417 = vmatmul.mubr.bf16.gmra.mrb[16].mxu1 %v1478_v62 }
  0x44   :  { %1388 = vmatprep.mubr.bf16.mxu0 %v1479_v63  ;;  %1420 = vmatprep.mubr.bf16.mxu1 %v1480_v0 }
  0x46   :  { %796 = vperm.xlu1 %1450, %v659_v1   ;;  %793 = vperm.xlu0 %1449, %v658_v2  }
  0x4a   :  { %802 = vperm.xlu1 %1450, %v661_v3   ;;  %799 = vperm.xlu0 %1449, %v660_v4  }
  0x4b   :  { %1389 = vmatmul.mubr.bf16.gmra.mrb[20].mxu0 %v1481_v5  ;;  %1421 = vmatmul.mubr.bf16.gmra.mrb[20].mxu1 %v1482_v6 }
  0x4c   :  { %1392 = vmatprep.mubr.bf16.mxu0 %v1483_v7  ;;  %1424 = vmatprep.mubr.bf16.mxu1 %v1484_v8 }
  0x4e   :  { %808 = vperm.xlu1 %1450, %v663_v9   ;;  %805 = vperm.xlu0 %1449, %v662_v10  }
  0x52   :  { %814 = vperm.xlu1 %1450, %v665_v11   ;;  %811 = vperm.xlu0 %1449, %v664_v12  }
  0x53   :  { %1393 = vmatmul.mubr.bf16.gmra.mrb[24].mxu0 %v1485_v13  ;;  %1425 = vmatmul.mubr.bf16.gmra.mrb[24].mxu1 %v1486_v14 }
  0x54   :  { %1396 = vmatprep.mubr.bf16.mxu0 %v1487_v15  ;;  %1428 = vmatprep.mubr.bf16.mxu1 %v1488_v16 }
  0x56   :  { %820 = vperm.xlu1 %1450, %v667_v17   ;;  %817 = vperm.xlu0 %1449, %v666_v18  }
  0x5a   :  { %826 = vperm.xlu1 %1450, %v669_v19   ;;  %823 = vperm.xlu0 %1449, %v668_v20  }
  0x5b   :  { %1397 = vmatmul.mubr.bf16.gmra.mrb[28].mxu0 %v1489_v21  ;;  %1429 = vmatmul.mubr.bf16.gmra.mrb[28].mxu1 %v1490_v22 }
  0x5e   :  { %832 = vperm.xlu1 %1450, %v671_v23   ;;  %829 = vperm.xlu0 %1449, %v670_v24  }
  0x62   :  { %838 = vperm.xlu1 %1450, %v673_v25   ;;  %835 = vperm.xlu0 %1449, %v672_v26   ;;  %v688_v25 = vlaneseq }
  0x64   :  { %v1912_v26 = vand.u32 127, %v688_v25 }
  0x66   :  { %844 = vperm.xlu1 %1450, %v675_v27   ;;  %841 = vperm.xlu0 %1449, %v674_v28  }
  0x6a   :  { %850 = vperm.xlu1 %1450, %v677_v29   ;;  %847 = vperm.xlu0 %1449, %v676_v30  }
  0x6e   :  { %856 = vperm.xlu1 %1450, %v679_v31   ;;  %853 = vperm.xlu0 %1449, %v678_v32  }
  0x72   :  { %862 = vperm.xlu1 %1450, %v681_v33   ;;  %859 = vperm.xlu0 %1449, %v680_v34  }
  0x76   :  { %868 = vperm.xlu1 %1450, %v683_v35   ;;  %865 = vperm.xlu0 %1449, %v682_v36  }
  0x7a   :  { %874 = vperm.xlu1 %1450, %v685_v37   ;;  %871 = vperm.xlu0 %1449, %v684_v38  }
  0x7e   :  { %880 = vperm.xlu1 %1450, %v687_v39   ;;  %877 = vperm.xlu0 %1449, %v686_v40  }
  0x81   :  { %v698_v41 = vpop.permute.xlu1 %697  ;;  %v1824_v42 = vpop.permute.xlu0 %691 }
  0x82   :  { %vm884_vm2 = vcmp.eq.s32.totalorder %v698_v41, %v1912_v26  ;;  %vm882_vm4 = vcmp.eq.s32.totalorder %v1824_v42, %v1912_v26 }
  0x85   :  { %v1826_v43 = vpop.permute.xlu1 %700  ;;  %v1828_v44 = vpop.permute.xlu0 %694 }
  0x86   :  { %vm885_vm5 = vcmp.eq.s32.totalorder %v1826_v43, %v1912_v26  ;;  %vm883_vm6 = vcmp.eq.s32.totalorder %v1828_v44, %v1912_v26 }
  0x89   :  { %v1830_v45 = vpop.permute.xlu1 %706  ;;  %v1832_v46 = vpop.permute.xlu0 %703 }
  0x8a   :  { %vm886_vm11 = vcmp.eq.s32.totalorder %v1832_v46, %v1912_v26  ;;  %vm887_vm15 = vcmp.eq.s32.totalorder %v1830_v45, %v1912_v26 }
  0x8d   :  { %v1834_v47 = vpop.permute.xlu1 %712  ;;  %v1836_v48 = vpop.permute.xlu0 %709 }
  0x8e   :  { %vm888_vm8 = vcmp.eq.s32.totalorder %v1836_v48, %v1912_v26  ;;  %vm889_vm12 = vcmp.eq.s32.totalorder %v1834_v47, %v1912_v26 }
  0x91   :  { %v1838_v49 = vpop.permute.xlu1 %718  ;;  %v1840_v50 = vpop.permute.xlu0 %715 }
  0x95   :  { %v1842_v51 = vpop.permute.xlu1 %724  ;;  %v1844_v52 = vpop.permute.xlu0 %721 }
  0x99   :  { %v1846_v53 = vpop.permute.xlu1 %730  ;;  %v1848_v54 = vpop.permute.xlu0 %727 }
  0x9d   :  { %v1850_v55 = vpop.permute.xlu1 %736  ;;  %v1852_v56 = vpop.permute.xlu0 %733 }
  0xa1   :  { %v1854_v57 = vpop.permute.xlu1 %742  ;;  %v1856_v58 = vpop.permute.xlu0 %739 }
  0xa5   :  { %v1858_v59 = vpop.permute.xlu1 %748  ;;  %v1860_v60 = vpop.permute.xlu0 %745 }
  0xa9   :  { %v1862_v61 = vpop.permute.xlu1 %754  ;;  %v1864_v62 = vpop.permute.xlu0 %751 }
  0xad   :  { %v1866_v63 = vpop.permute.xlu1 %760  ;;  %v1868_v0 = vpop.permute.xlu0 %757 }
  0xb1   :  { %v1870_v1 = vpop.permute.xlu1 %766  ;;  %v1872_v2 = vpop.permute.xlu0 %763 }
  0xb5   :  { %v1874_v3 = vpop.permute.xlu1 %772  ;;  %v1876_v4 = vpop.permute.xlu0 %769 }
  0xb9   :  { %v1878_v5 = vpop.permute.xlu1 %778  ;;  %v1880_v6 = vpop.permute.xlu0 %775 }
  0xbd   :  { %v1882_v7 = vpop.permute.xlu1 %784  ;;  %v1884_v8 = vpop.permute.xlu0 %781 }
  0xbe   :  { %2616 = vst [vmem:[#allocation2_spill] sm:$0xff] %v1882_v7  ;;  %2617 = vst [vmem:[#allocation3_spill] sm:$0xff] %v1884_v8 }
  0xc1   :  { %v1886_v9 = vpop.permute.xlu1 %790  ;;  %v788_v10 = vpop.permute.xlu0 %787 }
  0xc2   :  { %vm914_vm3 = vcmp.eq.s32.totalorder %v788_v10, %v1912_v26  ;;  %vm915_vm9 = vcmp.eq.s32.totalorder %v1886_v9, %v1912_v26 }
  0xc5   :  { %v797_v11 = vpop.permute.xlu1 %796  ;;  %v794_v12 = vpop.permute.xlu0 %793 }
  0xc6   :  { %vm916_vm1 = vcmp.eq.s32.totalorder %v794_v12, %v1912_v26  ;;  %vm917_vm7 = vcmp.eq.s32.totalorder %v797_v11, %v1912_v26 }
  0xc9   :  { %v1888_v13 = vpop.permute.xlu1 %802  ;;  %v1890_v14 = vpop.permute.xlu0 %799 }
  0xca   :  { %vm918_vm13 = vcmp.eq.s32.totalorder %v1890_v14, %v1912_v26 }
  0xcd   :  { %v1892_v15 = vpop.permute.xlu1 %808  ;;  %v1894_v16 = vpop.permute.xlu0 %805 }
  0xce   :  { %vm920_vm10 = vcmp.eq.s32.totalorder %v1894_v16, %v1912_v26  ;;  %vm921_vm14 = vcmp.eq.s32.totalorder %v1892_v15, %v1912_v26 }
  0xd1   :  { %v1896_v17 = vpop.permute.xlu1 %814  ;;  %v1898_v18 = vpop.permute.xlu0 %811 }
  0xd5   :  { %v1900_v19 = vpop.permute.xlu1 %820  ;;  %v1902_v20 = vpop.permute.xlu0 %817 }
  0xd9   :  { %v1904_v21 = vpop.permute.xlu1 %826  ;;  %v1906_v22 = vpop.permute.xlu0 %823 }
  0xdd   :  { %v1908_v23 = vpop.permute.xlu1 %832  ;;  %v1910_v24 = vpop.permute.xlu0 %829 }
  0xe1   :  { %v1914_v27 = vpop.permute.xlu1 %838  ;;  %v1916_v28 = vpop.permute.xlu0 %835 }
  0xe5   :  { %v1931_v25 = vpop.permute.xlu1 %844 }
  0xf6   :  { %v1370_v29 = vpop.f32.mrb[0].mxu0  ;;  %v1402_v30 = vpop.f32.mrb[0].mxu1 }
  0xf7   :  { %v948_v31 = vsel %vm884_vm2, %v1370_v29, 0.0  ;;  %v980_v32 = vsel %vm916_vm1, %v1402_v30, 0.0  ;;  %v369_v33 = vpop.f32.mrb[1].mxu0  ;;  %v497_v34 = vpop.f32.mrb[1].mxu1  ;;  %vm892_vm1 = vcmp.eq.s32.totalorder %v1844_v52, %v1912_v26  ;;  %vm927_vm2 = vcmp.eq.s32.totalorder %v1904_v21, %v1912_v26 }
  0xf8   :  { %v1371_v35 = vpop.f32.mrb[2].mxu0  ;;  %v1403_v36 = vpop.f32.mrb[2].mxu1  ;;  %v1017_v37 = vsel %vm1010_vm0, %v948_v31, 0.0  ;;  %v1113_v38 = vsel %vm1010_vm0, %v980_v32, 0.0  ;;  %v946_v39 = vsel %vm882_vm4, %v369_v33, 0.0  ;;  %v978_v40 = vsel %vm914_vm3, %v497_v34, 0.0 }
  0xf9   :  { %1018 = vadd.xlane.f32.xlu0 %v1017_v37  ;;  %1114 = vadd.xlane.f32.xlu1 %v1113_v38  ;;  %v372_v41 = vpop.f32.mrb[3].mxu0  ;;  %v500_v12 = vpop.f32.mrb[3].mxu1  ;;  %v1011_v42 = vsel %vm1010_vm0, %v946_v39, 0.0  ;;  %v1107_v10 = vsel %vm1010_vm0, %v978_v40, 0.0  ;;  %v949_v30 = vsel %vm885_vm5, %v1371_v35, 0.0  ;;  %v981_v40 = vsel %vm917_vm7, %v1403_v36, 0.0 }
  0xfa   :  { %v1933_v29 = vpop.permute.xlu0 %841  ;;  %v947_v31 = vsel %vm883_vm6, %v372_v41, 0.0  ;;  %v1020_v38 = vsel %vm1010_vm0, %v949_v30, 0.0  ;;  %v1116_v48 = vsel %vm1010_vm0, %v981_v40, 0.0  ;;  %v979_v36 = vsel %vm915_vm9, %v500_v12, 0.0 }
  0xfb   :  { %v1014_v39 = vsel %vm1010_vm0, %v947_v31, 0.0  ;;  %v1110_v12 = vsel %vm1010_vm0, %v979_v36, 0.0  ;;  %vm890_vm3 = vcmp.eq.s32.totalorder %v1840_v50, %v1912_v26  ;;  %vm893_vm4 = vcmp.eq.s32.totalorder %v1842_v51, %v1912_v26 }
  0xfc   :  { %vm919_vm5 = vcmp.eq.s32.totalorder %v1888_v13, %v1912_v26  ;;  %vm924_vm6 = vcmp.eq.s32.totalorder %v1902_v20, %v1912_v26  ;;  %vm898_vm7 = vcmp.eq.s32.totalorder %v1856_v58, %v1912_v26  ;;  %vm891_vm9 = vcmp.eq.s32.totalorder %v1838_v49, %v1912_v26 }
  0xfd   :  { %1012 = vadd.xlane.f32.xlu0 %v1011_v42  ;;  %1108 = vadd.xlane.f32.xlu1 %v1107_v10  ;;  %v1948_v10 = vpop.permute.xlu1 %850 }
  0xfe   :  { %v1374_v32 = vpop.f32.mrb[4].mxu0  ;;  %v1406_v33 = vpop.f32.mrb[4].mxu1 }
  0xff   :  { %v385_v34 = vpop.f32.mrb[5].mxu0  ;;  %v513_v37 = vpop.f32.mrb[5].mxu1  ;;  %v952_v35 = vsel %vm888_vm8, %v1374_v32, 0.0  ;;  %v984_v31 = vsel %vm920_vm10, %v1406_v33, 0.0  ;;  %vm922_vm8 = vcmp.eq.s32.totalorder %v1898_v18, %v1912_v26  ;;  %vm901_vm10 = vcmp.eq.s32.totalorder %v1858_v59, %v1912_v26 }
 0x100   :  { %v1375_v43 = vpop.f32.mrb[6].mxu0  ;;  %v1407_v44 = vpop.f32.mrb[6].mxu1  ;;  %v1029_v11 = vsel %vm1010_vm0, %v952_v35, 0.0  ;;  %v1125_v33 = vsel %vm1010_vm0, %v984_v31, 0.0  ;;  %v950_v35 = vsel %vm886_vm11, %v385_v34, 0.0  ;;  %vm899_vm11 = vcmp.eq.s32.totalorder %v1854_v57, %v1912_v26 }
 0x101   :  { %v388_v41 = vpop.f32.mrb[7].mxu0  ;;  %v1940_v42 = vpop.f32.mrb[7].mxu1  ;;  %1021 = vadd.xlane.f32.xlu0 %v1020_v38  ;;  %1015 = vadd.xlane.f32.xlu1 %v1014_v39  ;;  %v1023_v47 = vsel %vm1010_vm0, %v950_v35, 0.0  ;;  %v985_v31 = vsel %vm921_vm14, %v1407_v44, 0.0  ;;  %vm933_vm14 = vcmp.eq.s32.totalorder %v1931_v25, %v1912_v26 }
 0x102   :  { %v1950_v30 = vpop.permute.xlu0 %847  ;;  %v1976_v36 = vpop.permute.xlu1 %856  ;;  %v1128_v44 = vsel %vm1010_vm0, %v985_v31, 0.0  ;;  %v983_v21 = vsel %vm919_vm5, %v1940_v42, 0.0  ;;  %vm902_vm5 = vcmp.eq.s32.totalorder %v1864_v62, %v1912_v26 }
 0x105   :  { %1117 = vadd.xlane.f32.xlu0 %v1116_v48  ;;  %1030 = vadd.xlane.f32.xlu1 %v1029_v11  ;;  %v953_v48 = vsel %vm889_vm12, %v1375_v43, 0.0  ;;  %v982_v43 = vsel %vm918_vm13, %v513_v37, 0.0  ;;  %vm931_vm12 = vcmp.eq.s32.totalorder %v1914_v27, %v1912_v26  ;;  %vm930_vm13 = vcmp.eq.s32.totalorder %v1916_v28, %v1912_v26 }
 0x106   :  { %v1378_v32 = vpop.f32.mrb[8].mxu0  ;;  %v1410_v38 = vpop.f32.mrb[8].mxu1  ;;  %v1032_v46 = vsel %vm1010_vm0, %v953_v48, 0.0  ;;  %v1119_v35 = vsel %vm1010_vm0, %v982_v43, 0.0  ;;  %v951_v48 = vsel %vm887_vm15, %v388_v41, 0.0  ;;  %vm932_vm15 = vcmp.eq.s32.totalorder %v1933_v29, %v1912_v26 }
 0x107   :  { %v1952_v39 = vpop.f32.mrb[9].mxu0  ;;  %v1954_v9 = vpop.f32.mrb[9].mxu1  ;;  %v988_v41 = vsel %vm924_vm6, %v1410_v38, 0.0  ;;  %vm905_vm6 = vcmp.eq.s32.totalorder %v1866_v63, %v1912_v26 }
 0x108   :  { %v1960_v16 = vpop.f32.mrb[10].mxu0  ;;  %v1962_v40 = vpop.f32.mrb[10].mxu1  ;;  %v954_v38 = vsel %vm890_vm3, %v1952_v39, 0.0  ;;  %v1137_v29 = vsel %vm1010_vm0, %v988_v41, 0.0  ;;  %vm903_vm3 = vcmp.eq.s32.totalorder %v1862_v61, %v1912_v26 }
 0x109   :  { %v1966_v11 = vpop.f32.mrb[11].mxu0  ;;  %v1968_v8 = vpop.f32.mrb[11].mxu1  ;;  %1111 = vadd.xlane.f32.xlu0 %v1110_v12  ;;  %1126 = vadd.xlane.f32.xlu1 %v1125_v33  ;;  %v1035_v27 = vsel %vm1010_vm0, %v954_v38, 0.0 }
 0x10a   :  { %v1978_v34 = vpop.permute.xlu0 %853 }
 0x10d   :  { %1033 = vadd.xlane.f32.xlu0 %v1032_v46  ;;  %1024 = vadd.xlane.f32.xlu1 %v1023_v47  ;;  %v956_v46 = vsel %vm892_vm1, %v1378_v32, 0.0  ;;  %v1026_v32 = vsel %vm1010_vm0, %v951_v48, 0.0  ;;  %vm896_vm1 = vcmp.eq.s32.totalorder %v1852_v56, %v1912_v26  ;;  %v1122_v48 = vsel %vm1010_vm0, %v983_v21, 0.0 }
 0x10e   :  { %v1980_v12 = vpop.f32.mrb[12].mxu0  ;;  %v1982_v33 = vpop.f32.mrb[12].mxu1  ;;  %v1041_v43 = vsel %vm1010_vm0, %v956_v46, 0.0  ;;  %v957_v46 = vsel %vm893_vm4, %v1960_v16, 0.0  ;;  %vm925_vm4 = vcmp.eq.s32.totalorder %v1900_v19, %v1912_v26 }
 0x10f   :  { %v1984_v14 = vpop.f32.mrb[13].mxu0  ;;  %v1986_v7 = vpop.f32.mrb[13].mxu1  ;;  %v989_v57 = vsel %vm925_vm4, %v1962_v40, 0.0 }
 0x110   :  { %2618 = vst [vmem:[#allocation4_spill] sm:$0xff] %v1986_v7  ;;  %v1992_v15 = vpop.f32.mrb[14].mxu0  ;;  %v1994_v37 = vpop.f32.mrb[14].mxu1 }
 0x111   :  { %v2000_v47 = vpop.f32.mrb[15].mxu0  ;;  %v548_v7 = vpop.f32.mrb[15].mxu1  ;;  %1129 = vadd.xlane.f32.xlu0 %v1128_v44  ;;  %1120 = vadd.xlane.f32.xlu1 %v1119_v35 }
 0x112   :  { %v991_v45 = vsel %vm927_vm2, %v548_v7, 0.0  ;;  %v2020_v7 = vpop.permute.xlu1 %862  ;;  %v2022_v13 = vpop.permute.xlu0 %859  ;;  %vm904_vm2 = vcmp.eq.s32.totalorder %v1868_v0, %v1912_v26 }
 0x113   :  { %v2013_v52 = vsel %vm1010_vm0, %v991_v45, 0.0  ;;  %vm939_vm4 = vcmp.eq.s32.totalorder %v2020_v7, %v1912_v26 }
 0x115   :  { %1027 = vadd.xlane.f32.xlu0 %v1026_v32  ;;  %1042 = vadd.xlane.f32.xlu1 %v1041_v43 }
 0x116   :  { %v2040_v20 = vpop.f32.mrb[16].mxu0  ;;  %v1418_v42 = vpop.f32.mrb[16].mxu1 }
 0x117   :  { %v996_v31 = vsel %vm932_vm15, %v1418_v42, 0.0  ;;  %v433_v44 = vpop.f32.mrb[17].mxu0  ;;  %v561_v35 = vpop.f32.mrb[17].mxu1  ;;  %vm908_vm15 = vcmp.eq.s32.totalorder %v1876_v4, %v1912_v26 }
 0x118   :  { %v962_v50 = vsel %vm898_vm7, %v433_v44, 0.0  ;;  %v994_v39 = vsel %vm930_vm13, %v561_v35, 0.0  ;;  %v1387_v45 = vpop.f32.mrb[18].mxu0  ;;  %v1419_v21 = vpop.f32.mrb[18].mxu1  ;;  %v2063_v41 = vsel %vm1010_vm0, %v996_v31, 0.0  ;;  %v986_v44 = vsel %vm922_vm8, %v1954_v9, 0.0 }
 0x119   :  { %v2066_v32 = vsel %vm1010_vm0, %v962_v50, 0.0  ;;  %v2069_v43 = vsel %vm1010_vm0, %v994_v39, 0.0  ;;  %v965_v51 = vsel %vm901_vm10, %v1387_v45, 0.0  ;;  %v997_v58 = vsel %vm933_vm14, %v1419_v21, 0.0  ;;  %v436_v28 = vpop.f32.mrb[19].mxu0  ;;  %v564_v16 = vpop.f32.mrb[19].mxu1  ;;  %1123 = vadd.xlane.f32.xlu0 %v1122_v48  ;;  %1138 = vadd.xlane.f32.xlu1 %v1137_v29 }
 0x11a   :  { %v2080_v42 = vsel %vm1010_vm0, %v965_v51, 0.0  ;;  %v2083_v31 = vsel %vm1010_vm0, %v997_v58, 0.0  ;;  %v963_v59 = vsel %vm899_vm11, %v436_v28, 0.0  ;;  %v995_v25 = vsel %vm931_vm12, %v564_v16, 0.0  ;;  %v2114_v18 = vpop.permute.xlu1 %868  ;;  %v2116_v19 = vpop.permute.xlu0 %865 }
 0x11b   :  { %v2098_v35 = vsel %vm1010_vm0, %v963_v59, 0.0  ;;  %v2101_v48 = vsel %vm1010_vm0, %v995_v25, 0.0  ;;  %v1044_v29 = vsel %vm1010_vm0, %v957_v46, 0.0  ;;  %vm923_vm7 = vcmp.eq.s32.totalorder %v1896_v17, %v1912_v26 }
 0x11c   :  { %vm935_vm8 = vcmp.eq.s32.totalorder %v1948_v10, %v1912_v26  ;;  %vm934_vm10 = vcmp.eq.s32.totalorder %v1950_v30, %v1912_v26  ;;  %vm894_vm11 = vcmp.eq.s32.totalorder %v1848_v54, %v1912_v26  ;;  %vm937_vm12 = vcmp.eq.s32.totalorder %v1976_v36, %v1912_v26 }
 0x11d   :  { %1045 = vadd.xlane.f32.xlu0 %v1044_v29  ;;  %1036 = vadd.xlane.f32.xlu1 %v1035_v27  ;;  %vm936_vm13 = vcmp.eq.s32.totalorder %v1978_v34, %v1912_v26  ;;  %v955_v9 = vsel %vm891_vm9, %v1966_v11, 0.0  ;;  %vm897_vm14 = vcmp.eq.s32.totalorder %v1850_v55, %v1912_v26  ;;  %v1131_v46 = vsel %vm1010_vm0, %v986_v44, 0.0 }
 0x11e   :  { %v1390_v40 = vpop.f32.mrb[20].mxu0  ;;  %v1422_v38 = vpop.f32.mrb[20].mxu1  ;;  %v960_v34 = vsel %vm896_vm1, %v1980_v12, 0.0  ;;  %v1140_v45 = vsel %vm1010_vm0, %v989_v57, 0.0  ;;  %vm906_vm9 = vcmp.eq.s32.totalorder %v1872_v2, %v1912_v26  ;;  %vm907_vm1 = vcmp.eq.s32.totalorder %v1870_v1, %v1912_v26 }
 0x11f   :  { %v968_v49 = vsel %vm904_vm2, %v1390_v40, 0.0  ;;  %v1000_v11 = vsel %vm936_vm13, %v1422_v38, 0.0  ;;  %v449_v50 = vpop.f32.mrb[21].mxu0  ;;  %v577_v39 = vpop.f32.mrb[21].mxu1  ;;  %vm928_vm2 = vcmp.eq.s32.totalorder %v1910_v24, %v1912_v26  ;;  %v987_v29 = vsel %vm923_vm7, %v1968_v8, 0.0 }
 0x120   :  { %v2144_v21 = vsel %vm1010_vm0, %v968_v49, 0.0  ;;  %v2147_v51 = vsel %vm1010_vm0, %v1000_v11, 0.0  ;;  %v966_v56 = vsel %vm902_vm5, %v449_v50, 0.0  ;;  %v998_v0 = vsel %vm934_vm10, %v577_v39, 0.0  ;;  %v1391_v12 = vpop.f32.mrb[22].mxu0  ;;  %v1423_v58 = vpop.f32.mrb[22].mxu1 }
 0x121   :  { %v2156_v28 = vsel %vm1010_vm0, %v966_v56, 0.0  ;;  %v2159_v16 = vsel %vm1010_vm0, %v998_v0, 0.0  ;;  %v969_v59 = vsel %vm905_vm6, %v1391_v12, 0.0  ;;  %v1001_v62 = vsel %vm937_vm12, %v1423_v58, 0.0  ;;  %v452_v25 = vpop.f32.mrb[23].mxu0  ;;  %v580_v44 = vpop.f32.mrb[23].mxu1  ;;  %1141 = vadd.xlane.f32.xlu0 %v1140_v45  ;;  %1132 = vadd.xlane.f32.xlu1 %v1131_v46 }
 0x122   :  { %v2170_v30 = vsel %vm1010_vm0, %v969_v59, 0.0  ;;  %v2173_v57 = vsel %vm1010_vm0, %v1001_v62, 0.0  ;;  %v967_v63 = vsel %vm903_vm3, %v452_v25, 0.0  ;;  %v999_v36 = vsel %vm935_vm8, %v580_v44, 0.0  ;;  %v2204_v8 = vpop.permute.xlu1 %874  ;;  %v2206_v17 = vpop.permute.xlu0 %871 }
 0x123   :  { %v2188_v27 = vsel %vm1010_vm0, %v967_v63, 0.0  ;;  %v2191_v40 = vsel %vm1010_vm0, %v999_v36, 0.0  ;;  %v992_v61 = vsel %vm928_vm2, %v1982_v33, 0.0  ;;  %v1038_v38 = vsel %vm1010_vm0, %v955_v9, 0.0  ;;  %v2619_v63 = vld [vmem:[#allocation4_spill] sm:$0xff] }
 0x124   :  { %v1053_v10 = vsel %vm1010_vm0, %v960_v34, 0.0  ;;  %vm909_vm5 = vcmp.eq.s32.totalorder %v1874_v3, %v1912_v26  ;;  %vm926_vm3 = vcmp.eq.s32.totalorder %v1906_v22, %v1912_v26  ;;  %vm938_vm6 = vcmp.eq.s32.totalorder %v2022_v13, %v1912_v26  ;;  %v2621_v22 = vld [vmem:[#allocation3_spill] sm:$0xff] }
 0x125   :  { %vm895_vm7 = vcmp.eq.s32.totalorder %v1846_v53, %v1912_v26  ;;  %1039 = vadd.xlane.f32.xlu0 %v1038_v38  ;;  %1054 = vadd.xlane.f32.xlu1 %v1053_v10  ;;  %vm941_vm8 = vcmp.eq.s32.totalorder %v2114_v18, %v1912_v26  ;;  %vm940_vm10 = vcmp.eq.s32.totalorder %v2116_v19, %v1912_v26  ;;  %v958_v24 = vsel %vm894_vm11, %v1984_v14, 0.0 }
 0x126   :  { %vm900_vm12 = vcmp.eq.s32.totalorder %v1860_v60, %v1912_v26  ;;  %v1394_v33 = vpop.f32.mrb[24].mxu0  ;;  %v1426_v9 = vpop.f32.mrb[24].mxu1  ;;  %v1134_v46 = vsel %vm1010_vm0, %v987_v29, 0.0  ;;  %v961_v34 = vsel %vm897_vm14, %v1992_v15, 0.0  ;;  %v1149_v14 = vsel %vm1010_vm0, %v992_v61, 0.0  ;;  %v2620_v61 = vld [vmem:[#allocation2_spill] sm:$0xff] }
 0x127   :  { %v972_v19 = vsel %vm908_vm15, %v1394_v33, 0.0  ;;  %v1004_v49 = vsel %vm940_vm10, %v1426_v9, 0.0  ;;  %v465_v11 = vpop.f32.mrb[25].mxu0  ;;  %v593_v54 = vpop.f32.mrb[25].mxu1  ;;  %vm910_vm11 = vcmp.eq.s32.totalorder %v1880_v6, %v1912_v26  ;;  %vm911_vm13 = vcmp.eq.s32.totalorder %v1878_v5, %v1912_v26 }
 0x128   :  { %v2232_v50 = vsel %vm1010_vm0, %v972_v19, 0.0  ;;  %v2235_v39 = vsel %vm1010_vm0, %v1004_v49, 0.0  ;;  %v970_v55 = vsel %vm906_vm9, %v465_v11, 0.0  ;;  %v1002_v4 = vsel %vm938_vm6, %v593_v54, 0.0  ;;  %v1395_v15 = vpop.f32.mrb[26].mxu0  ;;  %v1427_v45 = vpop.f32.mrb[26].mxu1 }
 0x129   :  { %v2246_v56 = vsel %vm1010_vm0, %v970_v55, 0.0  ;;  %v2249_v0 = vsel %vm1010_vm0, %v1002_v4, 0.0  ;;  %v973_v2 = vsel %vm909_vm5, %v1395_v15, 0.0  ;;  %v1005_v13 = vsel %vm941_vm8, %v1427_v45, 0.0  ;;  %v468_v12 = vpop.f32.mrb[27].mxu0  ;;  %v596_v58 = vpop.f32.mrb[27].mxu1  ;;  %1135 = vadd.xlane.f32.xlu0 %v1134_v46  ;;  %1150 = vadd.xlane.f32.xlu1 %v1149_v14 }
 0x12a   :  { %v2258_v59 = vsel %vm1010_vm0, %v973_v2, 0.0  ;;  %v2261_v62 = vsel %vm1010_vm0, %v1005_v13, 0.0  ;;  %v971_v25 = vsel %vm907_vm1, %v468_v12, 0.0  ;;  %v1003_v3 = vsel %vm939_vm4, %v596_v58, 0.0  ;;  %v881_v18 = vpop.permute.xlu1 %880  ;;  %v878_v44 = vpop.permute.xlu0 %877 }
 0x12b   :  { %vm929_vm14 = vcmp.eq.s32.totalorder %v1908_v23, %v1912_v26  ;;  %v990_v36 = vsel %vm926_vm3, %v2619_v63, 0.0  ;;  %v2276_v29 = vsel %vm1010_vm0, %v971_v25, 0.0  ;;  %v2279_v1 = vsel %vm1010_vm0, %v1003_v3, 0.0 }
 0x12c   :  { %vm913_vm15 = vcmp.eq.s32.totalorder %v2620_v61, %v1912_v26  ;;  %v993_v7 = vsel %vm929_vm14, %v1994_v37, 0.0  ;;  %v1056_v23 = vsel %vm1010_vm0, %v961_v34, 0.0  ;;  %v1047_v38 = vsel %vm1010_vm0, %v958_v24, 0.0 }
 0x12d   :  { %vm943_vm9 = vcmp.eq.s32.totalorder %v2204_v8, %v1912_v26  ;;  %vm942_vm1 = vcmp.eq.s32.totalorder %v2206_v17, %v1912_v26  ;;  %1057 = vadd.xlane.f32.xlu0 %v1056_v23  ;;  %1048 = vadd.xlane.f32.xlu1 %v1047_v38  ;;  %vm912_vm2 = vcmp.eq.s32.totalorder %v2621_v22, %v1912_v26  ;;  %v959_v37 = vsel %vm895_vm7, %v2000_v47, 0.0 }
 0x12e   :  { %vm945_vm5 = vcmp.eq.s32.totalorder %v881_v18, %v1912_v26  ;;  %vm944_vm3 = vcmp.eq.s32.totalorder %v878_v44, %v1912_v26  ;;  %v1398_v10 = vpop.f32.mrb[28].mxu0  ;;  %v1430_v24 = vpop.f32.mrb[28].mxu1  ;;  %v1143_v33 = vsel %vm1010_vm0, %v990_v36, 0.0  ;;  %v964_v9 = vsel %vm900_vm12, %v2040_v20, 0.0 }
 0x12f   :  { %v976_v46 = vsel %vm912_vm2, %v1398_v10, 0.0  ;;  %v1008_v34 = vsel %vm944_vm3, %v1430_v24, 0.0  ;;  %v481_v19 = vpop.f32.mrb[29].mxu0  ;;  %v609_v49 = vpop.f32.mrb[29].mxu1  ;;  %v1152_v11 = vsel %vm1010_vm0, %v993_v7, 0.0  ;;  %v1050_v18 = vsel %vm1010_vm0, %v959_v37, 0.0 }
 0x130   :  { %v1101_v54 = vsel %vm1010_vm0, %v976_v46, 0.0  ;;  %v1197_v53 = vsel %vm1010_vm0, %v1008_v34, 0.0  ;;  %v974_v47 = vsel %vm910_vm11, %v481_v19, 0.0  ;;  %v1006_v14 = vsel %vm942_vm1, %v609_v49, 0.0  ;;  %v1399_v60 = vpop.f32.mrb[30].mxu0  ;;  %v1431_v20 = vpop.f32.mrb[30].mxu1 }
 0x131   :  { %v1095_v55 = vsel %vm1010_vm0, %v974_v47, 0.0  ;;  %v1191_v4 = vsel %vm1010_vm0, %v1006_v14, 0.0  ;;  %v977_v15 = vsel %vm913_vm15, %v1399_v60, 0.0  ;;  %v1009_v45 = vsel %vm945_vm5, %v1431_v20, 0.0  ;;  %v484_v2 = vpop.f32.mrb[31].mxu0  ;;  %v612_v6 = vpop.f32.mrb[31].mxu1  ;;  %1153 = vadd.xlane.f32.xlu0 %v1152_v11  ;;  %1144 = vadd.xlane.f32.xlu1 %v1143_v33 }
 0x132   :  { %v1104_v17 = vsel %vm1010_vm0, %v977_v15, 0.0  ;;  %v1200_v13 = vsel %vm1010_vm0, %v1009_v45, 0.0  ;;  %v975_v12 = vsel %vm911_vm13, %v484_v2, 0.0  ;;  %v1007_v58 = vsel %vm943_vm9, %v612_v6, 0.0 }
 0x133   :  { %v1098_v25 = vsel %vm1010_vm0, %v975_v12, 0.0  ;;  %v1194_v3 = vsel %vm1010_vm0, %v1007_v58, 0.0  ;;  %v1065_v44 = vsel %vm1010_vm0, %v964_v9, 0.0  ;;  %vm1203_vm0 = vcmask 7168  }
 0x135   :  { %1051 = vadd.xlane.f32.xlu0 %v1050_v18  ;;  %1066 = vadd.xlane.f32.xlu1 %v1065_v44 }
 0x139   :  { %1147 = vadd.xlane.f32.xlu0 %v2013_v52  ;;  %1162 = vadd.xlane.f32.xlu1 %v2063_v41 }
 0x13d   :  { %1069 = vadd.xlane.f32.xlu0 %v2080_v42  ;;  %1060 = vadd.xlane.f32.xlu1 %v2066_v32 }
 0x141   :  { %1165 = vadd.xlane.f32.xlu0 %v2083_v31  ;;  %1156 = vadd.xlane.f32.xlu1 %v2069_v43 }
 0x145   :  { %1063 = vadd.xlane.f32.xlu0 %v2098_v35  ;;  %1078 = vadd.xlane.f32.xlu1 %v2144_v21 }
 0x149   :  { %1159 = vadd.xlane.f32.xlu0 %v2101_v48  ;;  %1174 = vadd.xlane.f32.xlu1 %v2147_v51 }
 0x14d   :  { %1081 = vadd.xlane.f32.xlu0 %v2170_v30  ;;  %1072 = vadd.xlane.f32.xlu1 %v2156_v28 }
 0x151   :  { %1177 = vadd.xlane.f32.xlu0 %v2173_v57  ;;  %1168 = vadd.xlane.f32.xlu1 %v2159_v16 }
 0x155   :  { %1075 = vadd.xlane.f32.xlu0 %v2188_v27  ;;  %1090 = vadd.xlane.f32.xlu1 %v2232_v50 }
 0x159   :  { %1171 = vadd.xlane.f32.xlu0 %v2191_v40  ;;  %1186 = vadd.xlane.f32.xlu1 %v2235_v39 }
 0x15d   :  { %1093 = vadd.xlane.f32.xlu0 %v2258_v59  ;;  %1084 = vadd.xlane.f32.xlu1 %v2246_v56 }
 0x161   :  { %1189 = vadd.xlane.f32.xlu0 %v2261_v62  ;;  %1180 = vadd.xlane.f32.xlu1 %v2249_v0 }
 0x165   :  { %1087 = vadd.xlane.f32.xlu0 %v2276_v29  ;;  %1102 = vadd.xlane.f32.xlu1 %v1101_v54 }
 0x169   :  { %1183 = vadd.xlane.f32.xlu0 %v2279_v1  ;;  %1096 = vadd.xlane.f32.xlu1 %v1095_v55 }
 0x16d   :  { %1105 = vadd.xlane.f32.xlu0 %v1104_v17  ;;  %1192 = vadd.xlane.f32.xlu1 %v1191_v4 }
 0x171   :  { %1099 = vadd.xlane.f32.xlu0 %v1098_v25  ;;  %1198 = vadd.xlane.f32.xlu1 %v1197_v53 }
 0x175   :  { %1195 = vadd.xlane.f32.xlu0 %v1194_v3 }
 0x179   :  { %1201 = vadd.xlane.f32.xlu0 %v1200_v13 }
 0x186   :  { %v1115_v5 = vpop.xlane.xlu1 %1114  ;;  %v1019_v26 = vpop.xlane.xlu0 %1018 }
 0x187   :  { %1238 = vst.msk [vmem:[%s2614_s3 + $0x110] sm:$0xff] %vm1203_vm0, %v1115_v5  ;;  %1206 = vst.msk [vmem:[%s2614_s3 + $0x10] sm:$0xff] %vm1203_vm0, %v1019_v26 }
 0x18a   :  { %v1109_v52 = vpop.xlane.xlu1 %1108  ;;  %v1013_v41 = vpop.xlane.xlu0 %1012 }
 0x18b   :  { %1236 = vst.msk [vmem:[%s2614_s3 + $0x100] sm:$0xff] %vm1203_vm0, %v1109_v52  ;;  %1204 = vst.msk [vmem:[%s2614_s3] sm:$0xff] %vm1203_vm0, %v1013_v41 }
 0x18e   :  { %v1016_v32 = vpop.xlane.xlu1 %1015  ;;  %v1022_v43 = vpop.xlane.xlu0 %1021 }
 0x18f   :  { %1205 = vst.msk [vmem:[%s2614_s3 + $0x8] sm:$0xff] %vm1203_vm0, %v1016_v32  ;;  %1207 = vst.msk [vmem:[%s2614_s3 + $0x18] sm:$0xff] %vm1203_vm0, %v1022_v43 }
 0x192   :  { %v1031_v42 = vpop.xlane.xlu1 %1030  ;;  %v1118_v31 = vpop.xlane.xlu0 %1117 }
 0x193   :  { %1210 = vst.msk [vmem:[%s2614_s3 + $0x30] sm:$0xff] %vm1203_vm0, %v1031_v42  ;;  %1239 = vst.msk [vmem:[%s2614_s3 + $0x118] sm:$0xff] %vm1203_vm0, %v1118_v31 }
 0x196   :  { %v1127_v35 = vpop.xlane.xlu1 %1126  ;;  %v1112_v48 = vpop.xlane.xlu0 %1111 }
 0x197   :  { %1242 = vst.msk [vmem:[%s2614_s3 + $0x130] sm:$0xff] %vm1203_vm0, %v1127_v35  ;;  %1237 = vst.msk [vmem:[%s2614_s3 + $0x108] sm:$0xff] %vm1203_vm0, %v1112_v48 }
 0x19a   :  { %v1025_v21 = vpop.xlane.xlu1 %1024  ;;  %v1034_v51 = vpop.xlane.xlu0 %1033 }
 0x19b   :  { %1208 = vst.msk [vmem:[%s2614_s3 + $0x20] sm:$0xff] %vm1203_vm0, %v1025_v21  ;;  %1211 = vst.msk [vmem:[%s2614_s3 + $0x38] sm:$0xff] %vm1203_vm0, %v1034_v51 }
 0x19e   :  { %v1121_v28 = vpop.xlane.xlu1 %1120  ;;  %v1130_v16 = vpop.xlane.xlu0 %1129 }
 0x19f   :  { %1240 = vst.msk [vmem:[%s2614_s3 + $0x120] sm:$0xff] %vm1203_vm0, %v1121_v28  ;;  %1243 = vst.msk [vmem:[%s2614_s3 + $0x138] sm:$0xff] %vm1203_vm0, %v1130_v16 }
 0x1a2   :  { %v1043_v30 = vpop.xlane.xlu1 %1042  ;;  %v1028_v57 = vpop.xlane.xlu0 %1027 }
 0x1a3   :  { %1214 = vst.msk [vmem:[%s2614_s3 + $0x50] sm:$0xff] %vm1203_vm0, %v1043_v30  ;;  %1209 = vst.msk [vmem:[%s2614_s3 + $0x28] sm:$0xff] %vm1203_vm0, %v1028_v57 }
 0x1a6   :  { %v1139_v27 = vpop.xlane.xlu1 %1138  ;;  %v1124_v40 = vpop.xlane.xlu0 %1123 }
 0x1a7   :  { %1246 = vst.msk [vmem:[%s2614_s3 + $0x150] sm:$0xff] %vm1203_vm0, %v1139_v27  ;;  %1241 = vst.msk [vmem:[%s2614_s3 + $0x128] sm:$0xff] %vm1203_vm0, %v1124_v40 }
 0x1aa   :  { %v1037_v8 = vpop.xlane.xlu1 %1036  ;;  %v1046_v50 = vpop.xlane.xlu0 %1045 }
 0x1ab   :  { %1212 = vst.msk [vmem:[%s2614_s3 + $0x40] sm:$0xff] %vm1203_vm0, %v1037_v8  ;;  %1215 = vst.msk [vmem:[%s2614_s3 + $0x58] sm:$0xff] %vm1203_vm0, %v1046_v50 }
 0x1ae   :  { %v1133_v39 = vpop.xlane.xlu1 %1132  ;;  %v1142_v56 = vpop.xlane.xlu0 %1141 }
 0x1af   :  { %1244 = vst.msk [vmem:[%s2614_s3 + $0x140] sm:$0xff] %vm1203_vm0, %v1133_v39  ;;  %1247 = vst.msk [vmem:[%s2614_s3 + $0x158] sm:$0xff] %vm1203_vm0, %v1142_v56 }
 0x1b2   :  { %v1055_v0 = vpop.xlane.xlu1 %1054  ;;  %v1040_v59 = vpop.xlane.xlu0 %1039 }
 0x1b3   :  { %1218 = vst.msk [vmem:[%s2614_s3 + $0x70] sm:$0xff] %vm1203_vm0, %v1055_v0  ;;  %1213 = vst.msk [vmem:[%s2614_s3 + $0x48] sm:$0xff] %vm1203_vm0, %v1040_v59 }
 0x1b6   :  { %v1151_v62 = vpop.xlane.xlu1 %1150  ;;  %v1136_v63 = vpop.xlane.xlu0 %1135 }
 0x1b7   :  { %1250 = vst.msk [vmem:[%s2614_s3 + $0x170] sm:$0xff] %vm1203_vm0, %v1151_v62  ;;  %1245 = vst.msk [vmem:[%s2614_s3 + $0x148] sm:$0xff] %vm1203_vm0, %v1136_v63 }
 0x1ba   :  { %v1049_v36 = vpop.xlane.xlu1 %1048  ;;  %v1058_v29 = vpop.xlane.xlu0 %1057 }
 0x1bb   :  { %1216 = vst.msk [vmem:[%s2614_s3 + $0x60] sm:$0xff] %vm1203_vm0, %v1049_v36  ;;  %1219 = vst.msk [vmem:[%s2614_s3 + $0x78] sm:$0xff] %vm1203_vm0, %v1058_v29 }
 0x1be   :  { %v1145_v1 = vpop.xlane.xlu1 %1144  ;;  %v1154_v61 = vpop.xlane.xlu0 %1153 }
 0x1bf   :  { %1248 = vst.msk [vmem:[%s2614_s3 + $0x160] sm:$0xff] %vm1203_vm0, %v1145_v1  ;;  %1251 = vst.msk [vmem:[%s2614_s3 + $0x178] sm:$0xff] %vm1203_vm0, %v1154_v61 }
 0x1c2   :  { %v1067_v7 = vpop.xlane.xlu1 %1066  ;;  %v1052_v23 = vpop.xlane.xlu0 %1051 }
 0x1c3   :  { %1222 = vst.msk [vmem:[%s2614_s3 + $0x90] sm:$0xff] %vm1203_vm0, %v1067_v7  ;;  %1217 = vst.msk [vmem:[%s2614_s3 + $0x68] sm:$0xff] %vm1203_vm0, %v1052_v23 }
 0x1c6   :  { %v1163_v38 = vpop.xlane.xlu1 %1162  ;;  %v1148_v22 = vpop.xlane.xlu0 %1147 }
 0x1c7   :  { %1254 = vst.msk [vmem:[%s2614_s3 + $0x190] sm:$0xff] %vm1203_vm0, %v1163_v38  ;;  %1249 = vst.msk [vmem:[%s2614_s3 + $0x168] sm:$0xff] %vm1203_vm0, %v1148_v22 }
 0x1ca   :  { %v1061_v37 = vpop.xlane.xlu1 %1060  ;;  %v1070_v10 = vpop.xlane.xlu0 %1069 }
 0x1cb   :  { %1220 = vst.msk [vmem:[%s2614_s3 + $0x80] sm:$0xff] %vm1203_vm0, %v1061_v37  ;;  %1223 = vst.msk [vmem:[%s2614_s3 + $0x98] sm:$0xff] %vm1203_vm0, %v1070_v10 }
 0x1ce   :  { %v1157_v24 = vpop.xlane.xlu1 %1156  ;;  %v1166_v33 = vpop.xlane.xlu0 %1165 }
 0x1cf   :  { %1252 = vst.msk [vmem:[%s2614_s3 + $0x180] sm:$0xff] %vm1203_vm0, %v1157_v24  ;;  %1255 = vst.msk [vmem:[%s2614_s3 + $0x198] sm:$0xff] %vm1203_vm0, %v1166_v33 }
 0x1d2   :  { %v1079_v9 = vpop.xlane.xlu1 %1078  ;;  %v1064_v46 = vpop.xlane.xlu0 %1063 }
 0x1d3   :  { %1226 = vst.msk [vmem:[%s2614_s3 + $0xb0] sm:$0xff] %vm1203_vm0, %v1079_v9  ;;  %1221 = vst.msk [vmem:[%s2614_s3 + $0x88] sm:$0xff] %vm1203_vm0, %v1064_v46 }
 0x1d6   :  { %v1175_v34 = vpop.xlane.xlu1 %1174  ;;  %v1160_v19 = vpop.xlane.xlu0 %1159 }
 0x1d7   :  { %1258 = vst.msk [vmem:[%s2614_s3 + $0x1b0] sm:$0xff] %vm1203_vm0, %v1175_v34  ;;  %1253 = vst.msk [vmem:[%s2614_s3 + $0x188] sm:$0xff] %vm1203_vm0, %v1160_v19 }
 0x1da   :  { %v1073_v49 = vpop.xlane.xlu1 %1072  ;;  %v1082_v11 = vpop.xlane.xlu0 %1081 }
 0x1db   :  { %1224 = vst.msk [vmem:[%s2614_s3 + $0xa0] sm:$0xff] %vm1203_vm0, %v1073_v49  ;;  %1227 = vst.msk [vmem:[%s2614_s3 + $0xb8] sm:$0xff] %vm1203_vm0, %v1082_v11 }
 0x1de   :  { %v1169_v54 = vpop.xlane.xlu1 %1168  ;;  %v1178_v53 = vpop.xlane.xlu0 %1177 }
 0x1df   :  { %1256 = vst.msk [vmem:[%s2614_s3 + $0x1a0] sm:$0xff] %vm1203_vm0, %v1169_v54  ;;  %1259 = vst.msk [vmem:[%s2614_s3 + $0x1b8] sm:$0xff] %vm1203_vm0, %v1178_v53 }
 0x1e2   :  { %v1091_v47 = vpop.xlane.xlu1 %1090  ;;  %v1076_v14 = vpop.xlane.xlu0 %1075 }
 0x1e3   :  { %1230 = vst.msk [vmem:[%s2614_s3 + $0xd0] sm:$0xff] %vm1203_vm0, %v1091_v47  ;;  %1225 = vst.msk [vmem:[%s2614_s3 + $0xa8] sm:$0xff] %vm1203_vm0, %v1076_v14 }
 0x1e6   :  { %v1187_v60 = vpop.xlane.xlu1 %1186  ;;  %v1172_v20 = vpop.xlane.xlu0 %1171 }
 0x1e7   :  { %1262 = vst.msk [vmem:[%s2614_s3 + $0x1d0] sm:$0xff] %vm1203_vm0, %v1187_v60  ;;  %1257 = vst.msk [vmem:[%s2614_s3 + $0x1a8] sm:$0xff] %vm1203_vm0, %v1172_v20 }
 0x1ea   :  { %v1085_v55 = vpop.xlane.xlu1 %1084  ;;  %v1094_v4 = vpop.xlane.xlu0 %1093 }
 0x1eb   :  { %1228 = vst.msk [vmem:[%s2614_s3 + $0xc0] sm:$0xff] %vm1203_vm0, %v1085_v55  ;;  %1231 = vst.msk [vmem:[%s2614_s3 + $0xd8] sm:$0xff] %vm1203_vm0, %v1094_v4 }
 0x1ee   :  { %v1181_v15 = vpop.xlane.xlu1 %1180  ;;  %v1190_v45 = vpop.xlane.xlu0 %1189 }
 0x1ef   :  { %1260 = vst.msk [vmem:[%s2614_s3 + $0x1c0] sm:$0xff] %vm1203_vm0, %v1181_v15  ;;  %1263 = vst.msk [vmem:[%s2614_s3 + $0x1d8] sm:$0xff] %vm1203_vm0, %v1190_v45 }
 0x1f2   :  { %v1103_v2 = vpop.xlane.xlu1 %1102  ;;  %v1088_v6 = vpop.xlane.xlu0 %1087 }
 0x1f3   :  { %1234 = vst.msk [vmem:[%s2614_s3 + $0xf0] sm:$0xff] %vm1203_vm0, %v1103_v2  ;;  %1229 = vst.msk [vmem:[%s2614_s3 + $0xc8] sm:$0xff] %vm1203_vm0, %v1088_v6 }
 0x1f6   :  { %v1097_v17 = vpop.xlane.xlu1 %1096  ;;  %v1184_v13 = vpop.xlane.xlu0 %1183 }
 0x1f7   :  { %1232 = vst.msk [vmem:[%s2614_s3 + $0xe0] sm:$0xff] %vm1203_vm0, %v1097_v17  ;;  %1261 = vst.msk [vmem:[%s2614_s3 + $0x1c8] sm:$0xff] %vm1203_vm0, %v1184_v13 }
 0x1fa   :  { %v1193_v12 = vpop.xlane.xlu1 %1192  ;;  %v1106_v58 = vpop.xlane.xlu0 %1105 }
 0x1fb   :  { %1264 = vst.msk [vmem:[%s2614_s3 + $0x1e0] sm:$0xff] %vm1203_vm0, %v1193_v12  ;;  %1235 = vst.msk [vmem:[%s2614_s3 + $0xf8] sm:$0xff] %vm1203_vm0, %v1106_v58 }
 0x1fe   :  { %v1199_v25 = vpop.xlane.xlu1 %1198  ;;  %v1100_v3 = vpop.xlane.xlu0 %1099 }
 0x1ff   :  { %1266 = vst.msk [vmem:[%s2614_s3 + $0x1f0] sm:$0xff] %vm1203_vm0, %v1199_v25  ;;  %1233 = vst.msk [vmem:[%s2614_s3 + $0xe8] sm:$0xff] %vm1203_vm0, %v1100_v3 }
 0x202   :  { %v1196_v18 = vpop.xlane.xlu0 %1195 }
 0x203   :  { %1265 = vst.msk [vmem:[%s2614_s3 + $0x1e8] sm:$0xff] %vm1203_vm0, %v1196_v18 }
 0x206   :  { %v1202_v44 = vpop.xlane.xlu0 %1201 }
 0x207   :  { %1267 = vst.msk [vmem:[%s2614_s3 + $0x1f8] sm:$0xff] %vm1203_vm0, %v1202_v44 }

</bundles_post_ra>
